<compile_context>
chip_gen: v7x
topology: tpu7x:2x2x1
jax: 0.10.0
libtpu: 0.0.40
codegen_flags: <defaults>
</compile_context>

<pallas_src>
import functools

import jax
import jax.numpy as jnp
from jax.experimental import pallas as pl
from jax.experimental.pallas import tpu as pltpu

LANE = 128
SUBLANE_PACK = 16  # bf16 sublane packing: keep second-minor block dims %16


def _round_up(x, m):
    return (x + m - 1) // m * m


def _pad2(a, rows, cols):
    return jnp.pad(a, ((0, rows - a.shape[0]), (0, cols - a.shape[1])))


# --------------------------------------------------------------------------
# Kernel
# --------------------------------------------------------------------------
def _linkpred_mlp_kernel(xn_ref, xa_ref, w1n_ref, w1a_ref, b1_ref,
                         w2_ref, b2_ref, w3_ref, b3_ref, o_ref):
    # xn_ref: [te, 2H] bf16, gathered node features (already ReLU'd upstream).
    # xa_ref: [te, H]  bf16, raw edge attributes.
    # W1 is split so no [te, 3H] concat is needed in-kernel:
    #   h1 = xn @ W1_nodes + xa @ W1_attr + b1
    h = (jnp.dot(xn_ref[...], w1n_ref[...], preferred_element_type=jnp.float32)
         + jnp.dot(xa_ref[...], w1a_ref[...], preferred_element_type=jnp.float32)
         + b1_ref[...])
    h = jnp.maximum(h, 0.0).astype(jnp.bfloat16)
    # TODO(synk): nn.Dropout omitted — eval-mode (identity) semantics.

    # Linear(H -> 128-padded 25) + ReLU
    h = jnp.dot(h, w2_ref[...], preferred_element_type=jnp.float32) + b2_ref[...]
    h = jnp.maximum(h, 0.0).astype(jnp.bfloat16)

    # Linear(25 -> 128-padded n_classes) + sigmoid; lane-dense bf16 store.
    logits = jnp.dot(h, w3_ref[...], preferred_element_type=jnp.float32) + b3_ref[...]
    o_ref[...] = jax.nn.sigmoid(logits).astype(jnp.bfloat16)


# --------------------------------------------------------------------------
# Parameter prep (run ONCE, hoisted out of the forward path)
# --------------------------------------------------------------------------
def prepare_params(params, n_hidden, n_classes):
    """Split W1 into node/attr halves, zero-pad all widths to 128 lanes and
    cast weights to bf16 (biases stay f32). Padded rows/cols are zero so they
    contribute nothing to the real output columns."""
    w1, b1, w2, b2, w3, b3 = params
    two_h = 2 * n_hidden
    h1p = _round_up(n_hidden, LANE)
    h2p = _round_up(25, LANE)
    ncp = _round_up(n_classes, LANE)
    w1n = _pad2(w1[:two_h, :], two_h, h1p).astype(jnp.bfloat16)
    w1a = _pad2(w1[two_h:, :], n_hidden, h1p).astype(jnp.bfloat16)
    b1p = _pad2(b1, 1, h1p)
    w2p = _pad2(w2, h1p, h2p).astype(jnp.bfloat16)
    b2p = _pad2(b2, 1, h2p)
    w3p = _pad2(w3, h2p, ncp).astype(jnp.bfloat16)
    b3p = _pad2(b3, 1, ncp)
    return (w1n, w1a, b1p, w2p, b2p, w3p, b3p)


# --------------------------------------------------------------------------
# Pallas wrapper
# --------------------------------------------------------------------------
def _choose_tile(e_total, tile_e):
    e_min = _round_up(max(e_total, SUBLANE_PACK), SUBLANE_PACK)
    te = min(tile_e, e_min)
    # Guarantee >=2 grid steps whenever E allows it (v7x 2-TC sharding via
    # dimension_semantics=("parallel",); no-op on single-TC v5e/v6e).
    if e_min >= 2 * SUBLANE_PACK:
        te = min(te, _round_up(pl.cdiv(e_min, 2), SUBLANE_PACK))
    te = _round_up(te, SUBLANE_PACK)
    e_pad = _round_up(e_min, te)
    return te, e_pad


def linkpred_mlp_pallas(xn, xa, params_padded, *, tile_e=2048,
                        edge_stream_buffers=2):
    """xn: [E, 2H] bf16 gathered+ReLU'd node features; xa: [E, H] bf16 attrs.
    Returns [E_pad, 128] bf16 padded sigmoid outputs."""
    w1n, w1a, b1, w2, b2, w3, b3 = params_padded
    e_total, two_h = xn.shape
    h_attr = xa.shape[1]

    te, e_pad = _choose_tile(e_total, tile_e)
    if e_pad != e_total:
        xn = jnp.pad(xn, ((0, e_pad - e_total), (0, 0)))
        xa = jnp.pad(xa, ((0, e_pad - e_total), (0, 0)))
    grid = (e_pad // te,)

    # Edge streams: pipelined over the grid.  edge_stream_buffers=3 is a v5e
    # knob (exposed-DMA mitigation); default double-buffering otherwise.
    if edge_stream_buffers == 2:
        xn_spec = pl.BlockSpec((te, two_h), lambda i: (i, 0))
        xa_spec = pl.BlockSpec((te, h_attr), lambda i: (i, 0))
    else:
        mode = pl.Buffered(edge_stream_buffers)
        xn_spec = pl.BlockSpec((te, two_h), lambda i: (i, 0), pipeline_mode=mode)
        xa_spec = pl.BlockSpec((te, h_attr), lambda i: (i, 0), pipeline_mode=mode)

    def wspec(shape):
        # Index-invariant: weights/biases are DMA'd once and stay VMEM-resident.
        return pl.BlockSpec(shape, lambda i: (0, 0))

    out = pl.pallas_call(
        _linkpred_mlp_kernel,
        out_shape=jax.ShapeDtypeStruct((e_pad, LANE), jnp.bfloat16),
        grid=grid,
        in_specs=[
            xn_spec, xa_spec,
            wspec(w1n.shape), wspec(w1a.shape), wspec(b1.shape),
            wspec(w2.shape), wspec(b2.shape),
            wspec(w3.shape), wspec(b3.shape),
        ],
        out_specs=pl.BlockSpec((te, LANE), lambda i: (i, 0)),
        compiler_params=pltpu.CompilerParams(
            dimension_semantics=("parallel",)),
    )(xn, xa, w1n, w1a, b1, w2, b2, w3, b3)
    return out


def linkpred_head_forward(x, pos_edge_index, pos_edge_attr,
                          neg_edge_index, neg_edge_attr, params_padded,
                          *, n_hidden, n_classes, tile_e=2048):
    e_pos = pos_edge_index.shape[1]
    e_neg = neg_edge_index.shape[1]

    # Concat pos/neg BEFORE the gather: the edge slab is built exactly once
    # and both edge sets share one pallas_call (one weight DMA, long pipeline).
    edge_index = jnp.concatenate([pos_edge_index, neg_edge_index], axis=1)
    edge_attr = jnp.concatenate(
        [pos_edge_attr.reshape(-1, pos_edge_attr.shape[-1]),
         neg_edge_attr.reshape(-1, neg_edge_attr.shape[-1])], axis=0)

    # Gather + ReLU on the gathered node features (matches `.relu()` in the
    # reference); bf16 cast fuses into the gather/convert under jit.
    # TODO(synk): fusing this gather into the kernel (edge_index via scalar
    # prefetch + in-kernel row gather from VMEM-resident x) would remove the
    # remaining [E,2H] HBM round-trip; not done here pending robust
    # dynamic-gather lowering for arbitrary n_nodes.
    xn = jnp.maximum(x[edge_index.T].reshape(-1, 2 * n_hidden), 0.0)
    xn = xn.astype(jnp.bfloat16)
    xa = edge_attr.astype(jnp.bfloat16)

    out = linkpred_mlp_pallas(xn, xa, params_padded, tile_e=tile_e)
    out = out[:e_pos + e_neg, :n_classes].astype(jnp.float32)
    return out[:e_pos], out[e_pos:]


# --------------------------------------------------------------------------
# Init + references
# --------------------------------------------------------------------------
def init_linear(key, fan_in, fan_out):
    """Deterministic torch.nn.Linear-style init; W stored as [in, out]."""
    kw, kb = jax.random.split(key)
    bound = 1.0 / (fan_in ** 0.5)
    w = jax.random.uniform(kw, (fan_in, fan_out), jnp.float32, -bound, bound)
    b = jax.random.uniform(kb, (1, fan_out), jnp.float32, -bound, bound)
    return w, b


def reference_forward_f32(x, edge_index, edge_attr, params, n_hidden):
    """Pure-f32 JAX reference mirroring the PyTorch forward (eval mode)."""
    w1, b1, w2, b2, w3, b3 = params
    feats = jnp.maximum(x[edge_index.T].reshape(-1, 2 * n_hidden), 0.0)
    z = jnp.concatenate([feats, edge_attr], axis=1)
    h = jnp.maximum(z @ w1 + b1, 0.0)
    h = jnp.maximum(h @ w2 + b2, 0.0)
    return jax.nn.sigmoid(h @ w3 + b3)


def reference_forward_bf16(x, edge_index, edge_attr, params, n_hidden):
    """Matched-precision reference (bf16 MXU operands, f32 accum, bf16 out)."""
    w1, b1, w2, b2, w3, b3 = params
    bf = jnp.bfloat16
    feats = jnp.maximum(x[edge_index.T].reshape(-1, 2 * n_hidden), 0.0).astype(bf)
    attr = edge_attr.astype(bf)
    h = (jnp.dot(feats, w1[:2 * n_hidden].astype(bf),
                 preferred_element_type=jnp.float32)
         + jnp.dot(attr, w1[2 * n_hidden:].astype(bf),
                   preferred_element_type=jnp.float32)
         + b1)
    h = jnp.maximum(h, 0.0).astype(bf)
    h = jnp.dot(h, w2.astype(bf), preferred_element_type=jnp.float32) + b2
    h = jnp.maximum(h, 0.0).astype(bf)
    logits = jnp.dot(h, w3.astype(bf), preferred_element_type=jnp.float32) + b3
    return jax.nn.sigmoid(logits).astype(bf).astype(jnp.float32)


# --------------------------------------------------------------------------
# Demo / self-test
# --------------------------------------------------------------------------
if __name__ == "__main__":
    n_hidden = 32
    n_classes = 4
    n_nodes = 16
    n_edges = 16   # per edge set -> 32 fused edges -> 2-step grid

    key = jax.random.PRNGKey(0)
    (k_x, k_pe, k_pa, k_ne, k_na, k_l1, k_l2, k_l3) = jax.random.split(key, 8)

    x = jax.random.normal(k_x, (n_nodes, n_hidden), jnp.float32)
    pos_edge_index = jax.random.randint(k_pe, (2, n_edges), 0, n_nodes)
    neg_edge_index = jax.random.randint(k_ne, (2, n_edges), 0, n_nodes)
    pos_edge_attr = jax.random.normal(k_pa, (n_edges, n_hidden), jnp.float32)
    neg_edge_attr = jax.random.normal(k_na, (n_edges, n_hidden), jnp.float32)

    w1, b1 = init_linear(k_l1, 3 * n_hidden, n_hidden)
    w2, b2 = init_linear(k_l2, n_hidden, 25)
    w3, b3 = init_linear(k_l3, 25, n_classes)
    params = (w1, b1, w2, b2, w3, b3)

    # Pad / split / cast parameters once (hoisted out of the forward path).
    params_padded = prepare_params(params, n_hidden, n_classes)

    forward = jax.jit(functools.partial(
        linkpred_head_forward, n_hidden=n_hidden, n_classes=n_classes))
    out_pos, out_neg = forward(x, pos_edge_index, pos_edge_attr,
                               neg_edge_index, neg_edge_attr, params_padded)
    jax.block_until_ready((out_pos, out_neg))

    assert out_pos.shape == (n_edges, n_classes)
    assert out_neg.shape == (n_edges, n_classes)

    # Tight check vs. a reference that mirrors the kernel's bf16-operand math.
    mref_pos = reference_forward_bf16(x, pos_edge_index, pos_edge_attr, params, n_hidden)
    mref_neg = reference_forward_bf16(x, neg_edge_index, neg_edge_attr, params, n_hidden)
    assert jnp.allclose(out_pos, mref_pos, atol=3e-3, rtol=1e-2)
    assert jnp.allclose(out_neg, mref_neg, atol=3e-3, rtol=1e-2)

    # Semantic check vs. the pure-f32 PyTorch-equivalent reference; looser
    # tolerance because the kernel uses bf16 MXU operands + bf16 output store.
    fref_pos = reference_forward_f32(x, pos_edge_index, pos_edge_attr, params, n_hidden)
    fref_neg = reference_forward_f32(x, neg_edge_index, neg_edge_attr, params, n_hidden)
    assert jnp.allclose(out_pos, fref_pos, atol=2e-2, rtol=2e-2)
    assert jnp.allclose(out_neg, fref_neg, atol=2e-2, rtol=2e-2)

    print("KERNEL_OK")
</pallas_src>

<mosaic_0001>
module attributes {stable_mosaic.version = 11 : i64} {
  func.func @_linkpred_mlp_kernel(%arg0: i32, %arg1: memref<16x64xbf16, #tpu.memory_space<vmem>>, %arg2: memref<16x32xbf16, #tpu.memory_space<vmem>>, %arg3: memref<64x128xbf16, #tpu.memory_space<vmem>>, %arg4: memref<32x128xbf16, #tpu.memory_space<vmem>>, %arg5: memref<1x128xf32, #tpu.memory_space<vmem>>, %arg6: memref<128x128xbf16, #tpu.memory_space<vmem>>, %arg7: memref<1x128xf32, #tpu.memory_space<vmem>>, %arg8: memref<128x128xbf16, #tpu.memory_space<vmem>>, %arg9: memref<1x128xf32, #tpu.memory_space<vmem>>, %arg10: memref<16x128xbf16, #tpu.memory_space<vmem>>) attributes {dimension_semantics = [#tpu.dimension_semantics<parallel>], iteration_bounds = array<i64: 2>, scalar_prefetch = 0 : i64, scratch_operands = 0 : i64, tpu.core_type = #tpu.core_type<tc>, window_params = [{transform_indices = @transform_0, window_bounds = array<i64: 16, 64>}, {transform_indices = @transform_1, window_bounds = array<i64: 16, 32>}, {pipeline_mode = #tpu.pipeline_mode<synchronous>, transform_indices = @transform_2, window_bounds = array<i64: 64, 128>}, {pipeline_mode = #tpu.pipeline_mode<synchronous>, transform_indices = @transform_3, window_bounds = array<i64: 32, 128>}, {pipeline_mode = #tpu.pipeline_mode<synchronous>, transform_indices = @transform_4, window_bounds = array<i64: 1, 128>}, {pipeline_mode = #tpu.pipeline_mode<synchronous>, transform_indices = @transform_5, window_bounds = array<i64: 128, 128>}, {pipeline_mode = #tpu.pipeline_mode<synchronous>, transform_indices = @transform_6, window_bounds = array<i64: 1, 128>}, {pipeline_mode = #tpu.pipeline_mode<synchronous>, transform_indices = @transform_7, window_bounds = array<i64: 128, 128>}, {pipeline_mode = #tpu.pipeline_mode<synchronous>, transform_indices = @transform_8, window_bounds = array<i64: 1, 128>}, {transform_indices = @transform_9, window_bounds = array<i64: 16, 128>}]} {
    %c0 = arith.constant 0 : index
    %c0_0 = arith.constant 0 : index
    %0 = vector.load %arg1[%c0, %c0_0] : memref<16x64xbf16, #tpu.memory_space<vmem>>, vector<16x64xbf16>
    %c0_1 = arith.constant 0 : index
    %c0_2 = arith.constant 0 : index
    %1 = vector.load %arg3[%c0_1, %c0_2] : memref<64x128xbf16, #tpu.memory_space<vmem>>, vector<64x128xbf16>
    %cst = arith.constant dense<0.000000e+00> : vector<16x128xf32>
    %2 = tpu.matmul %0, %1, %cst {dimension_numbers = #tpu.dot_dimension_numbers<[1], [0], [0], [1], [0, 0, 1, 1], [], []>} : vector<16x64xbf16>, vector<64x128xbf16>, vector<16x128xf32> -> vector<16x128xf32>
    %c0_3 = arith.constant 0 : index
    %c0_4 = arith.constant 0 : index
    %3 = vector.load %arg2[%c0_3, %c0_4] : memref<16x32xbf16, #tpu.memory_space<vmem>>, vector<16x32xbf16>
    %c0_5 = arith.constant 0 : index
    %c0_6 = arith.constant 0 : index
    %4 = vector.load %arg4[%c0_5, %c0_6] : memref<32x128xbf16, #tpu.memory_space<vmem>>, vector<32x128xbf16>
    %cst_7 = arith.constant dense<0.000000e+00> : vector<16x128xf32>
    %5 = tpu.matmul %3, %4, %cst_7 {dimension_numbers = #tpu.dot_dimension_numbers<[1], [0], [0], [1], [0, 0, 1, 1], [], []>} : vector<16x32xbf16>, vector<32x128xbf16>, vector<16x128xf32> -> vector<16x128xf32>
    %6 = arith.addf %2, %5 : vector<16x128xf32>
    %c0_8 = arith.constant 0 : index
    %c0_9 = arith.constant 0 : index
    %7 = vector.load %arg5[%c0_8, %c0_9] : memref<1x128xf32, #tpu.memory_space<vmem>>, vector<1x128xf32>
    %8 = vector.broadcast %7 : vector<1x128xf32> to vector<16x128xf32>
    %9 = arith.addf %6, %8 : vector<16x128xf32>
    %cst_10 = arith.constant 0.000000e+00 : f32
    %10 = vector.broadcast %cst_10 : f32 to vector<16x128xf32>
    %11 = arith.maximumf %9, %10 : vector<16x128xf32>
    %12 = arith.truncf %11 : vector<16x128xf32> to vector<16x128xbf16>
    %c0_11 = arith.constant 0 : index
    %c0_12 = arith.constant 0 : index
    %13 = vector.load %arg6[%c0_11, %c0_12] : memref<128x128xbf16, #tpu.memory_space<vmem>>, vector<128x128xbf16>
    %cst_13 = arith.constant dense<0.000000e+00> : vector<16x128xf32>
    %14 = tpu.matmul %12, %13, %cst_13 {dimension_numbers = #tpu.dot_dimension_numbers<[1], [0], [0], [1], [0, 0, 1, 1], [], []>} : vector<16x128xbf16>, vector<128x128xbf16>, vector<16x128xf32> -> vector<16x128xf32>
    %c0_14 = arith.constant 0 : index
    %c0_15 = arith.constant 0 : index
    %15 = vector.load %arg7[%c0_14, %c0_15] : memref<1x128xf32, #tpu.memory_space<vmem>>, vector<1x128xf32>
    %16 = vector.broadcast %15 : vector<1x128xf32> to vector<16x128xf32>
    %17 = arith.addf %14, %16 : vector<16x128xf32>
    %cst_16 = arith.constant 0.000000e+00 : f32
    %18 = vector.broadcast %cst_16 : f32 to vector<16x128xf32>
    %19 = arith.maximumf %17, %18 : vector<16x128xf32>
    %20 = arith.truncf %19 : vector<16x128xf32> to vector<16x128xbf16>
    %c0_17 = arith.constant 0 : index
    %c0_18 = arith.constant 0 : index
    %21 = vector.load %arg8[%c0_17, %c0_18] : memref<128x128xbf16, #tpu.memory_space<vmem>>, vector<128x128xbf16>
    %cst_19 = arith.constant dense<0.000000e+00> : vector<16x128xf32>
    %22 = tpu.matmul %20, %21, %cst_19 {dimension_numbers = #tpu.dot_dimension_numbers<[1], [0], [0], [1], [0, 0, 1, 1], [], []>} : vector<16x128xbf16>, vector<128x128xbf16>, vector<16x128xf32> -> vector<16x128xf32>
    %c0_20 = arith.constant 0 : index
    %c0_21 = arith.constant 0 : index
    %23 = vector.load %arg9[%c0_20, %c0_21] : memref<1x128xf32, #tpu.memory_space<vmem>>, vector<1x128xf32>
    %24 = vector.broadcast %23 : vector<1x128xf32> to vector<16x128xf32>
    %25 = arith.addf %22, %24 : vector<16x128xf32>
    %26 = arith.negf %25 : vector<16x128xf32>
    %27 = math.exp %26 : vector<16x128xf32>
    %cst_22 = arith.constant 1.000000e+00 : f32
    %28 = vector.broadcast %cst_22 : f32 to vector<16x128xf32>
    %29 = arith.addf %28, %27 : vector<16x128xf32>
    %30 = arith.divf %28, %29 : vector<16x128xf32>
    %31 = arith.truncf %30 : vector<16x128xf32> to vector<16x128xbf16>
    %c0_23 = arith.constant 0 : index
    %c0_24 = arith.constant 0 : index
    %32 = vector.load %arg10[%c0_23, %c0_24] : memref<16x128xbf16, #tpu.memory_space<vmem>>, vector<16x128xbf16>
    tpu.vector_store %arg10[%c0_23, %c0_24], %31 {strides = array<i32>} : memref<16x128xbf16, #tpu.memory_space<vmem>>, vector<16x128xbf16>,
    return
  }
  func.func @transform_0(%arg0: i32) -> (i32, i32) {
    %c0_i32 = arith.constant 0 : i32
    %c0_i32_0 = arith.constant 0 : i32
    return %arg0, %c0_i32 : i32, i32
  }
  func.func @transform_1(%arg0: i32) -> (i32, i32) {
    %c0_i32 = arith.constant 0 : i32
    %c0_i32_0 = arith.constant 0 : i32
    return %arg0, %c0_i32 : i32, i32
  }
  func.func @transform_2(%arg0: i32) -> (i32, i32) {
    %c0_i32 = arith.constant 0 : i32
    %c0_i32_0 = arith.constant 0 : i32
    %c0_i32_1 = arith.constant 0 : i32
    return %c0_i32, %c0_i32_0 : i32, i32
  }
  func.func @transform_3(%arg0: i32) -> (i32, i32) {
    %c0_i32 = arith.constant 0 : i32
    %c0_i32_0 = arith.constant 0 : i32
    %c0_i32_1 = arith.constant 0 : i32
    return %c0_i32, %c0_i32_0 : i32, i32
  }
  func.func @transform_4(%arg0: i32) -> (i32, i32) {
    %c0_i32 = arith.constant 0 : i32
    %c0_i32_0 = arith.constant 0 : i32
    %c0_i32_1 = arith.constant 0 : i32
    return %c0_i32, %c0_i32_0 : i32, i32
  }
  func.func @transform_5(%arg0: i32) -> (i32, i32) {
    %c0_i32 = arith.constant 0 : i32
    %c0_i32_0 = arith.constant 0 : i32
    %c0_i32_1 = arith.constant 0 : i32
    return %c0_i32, %c0_i32_0 : i32, i32
  }
  func.func @transform_6(%arg0: i32) -> (i32, i32) {
    %c0_i32 = arith.constant 0 : i32
    %c0_i32_0 = arith.constant 0 : i32
    %c0_i32_1 = arith.constant 0 : i32
    return %c0_i32, %c0_i32_0 : i32, i32
  }
  func.func @transform_7(%arg0: i32) -> (i32, i32) {
    %c0_i32 = arith.constant 0 : i32
    %c0_i32_0 = arith.constant 0 : i32
    %c0_i32_1 = arith.constant 0 : i32
    return %c0_i32, %c0_i32_0 : i32, i32
  }
  func.func @transform_8(%arg0: i32) -> (i32, i32) {
    %c0_i32 = arith.constant 0 : i32
    %c0_i32_0 = arith.constant 0 : i32
    %c0_i32_1 = arith.constant 0 : i32
    return %c0_i32, %c0_i32_0 : i32, i32
  }
  func.func @transform_9(%arg0: i32) -> (i32, i32) {
    %c0_i32 = arith.constant 0 : i32
    %c0_i32_0 = arith.constant 0 : i32
    return %arg0, %c0_i32 : i32, i32
  }
}

</mosaic_0001>

<bundles_post_ra>
// kernel: linkpred_head_forward.1
= control target key start
LH: loop header
LB: loop body
LE: loop exit
PB: predicated region body
PF: predicated region fallthrough
CT: control target
= control target key end

     0   :  { %s1081_s30 = smov 0   ;;  %s1211_s0 = inlined_call_operand.vmem [shape: bf16[32,64], index: 0, kind: input, shape index: {}]   ;;  %s1212_s1 = inlined_call_operand.vmem [shape: bf16[32,32], index: 1, kind: input, shape index: {}]   ;;  %s1213_s2 = inlined_call_operand.vmem [shape: bf16[64,128], index: 2, kind: input, shape index: {}]   ;;  %s1214_s3 = inlined_call_operand.vmem [shape: bf16[32,128], index: 3, kind: input, shape index: {}]   ;;  %s1215_s4 = inlined_call_operand.vmem [shape: f32[1,128], index: 4, kind: input, shape index: {}]   ;;  %s1216_s5 = inlined_call_operand.vmem [shape: bf16[128,128], index: 5, kind: input, shape index: {}]   ;;  %s1217_s6 = inlined_call_operand.vmem [shape: f32[1,128], index: 6, kind: input, shape index: {}]   ;;  %s1218_s7 = inlined_call_operand.vmem [shape: bf16[128,128], index: 7, kind: input, shape index: {}]   ;;  %s1219_s8 = inlined_call_operand.vmem [shape: f32[1,128], index: 8, kind: input, shape index: {}]   ;;  %s1220_s9 = inlined_call_operand.vmem [shape: bf16[32,128], index: 9, kind: output, shape index: {}]  }
   0x1 LB: > { %s840_s10 = sadd.s32 4294967295, %s1027_s30   ;;  %p844_p0 = scmp.ge.s32.totalorder %s1027_s30, 1  ;;  %s1027_s30 = sphi %s1081_s30, %s19_s30  }
   0x2   : > { %p299_p1 = scmp.lt.s32.totalorder %s1027_s30, 3 }
   0x4   : > { %p300_p2 = pnand %p844_p0, %p299_p1 }
   0x5   : > { %v989_v0 = vld [vmem:[%s1213_s2] sm:$0xff] (!%p300_p2)   ;;  %v1029_v1 = vmov (!%p300_p2), 0.0   ;;  %v990_v2 = vld [vmem:[%s1213_s2 + $0x8] sm:$0xff] (!%p300_p2)   ;;  %vm1030_vm0 = vmmov (!%p300_p2), 0   ;;  %s845_s17 = sshll.u32 (!%p300_p2), %s840_s10, 1  ;;  %v992_v5 = vld [vmem:[%s1213_s2 + $0x10] sm:$0xff] (!%p300_p2)  }
   0x6   : > { %303 = sbr.rel (%p300_p2) target bundleno = 709 (0x2c5), region = 56  ;;  %927 = vmatprep.subr.bf16.mxu1 (!%p300_p2), %v1029_v1  ;;  %919 = vmatprep.subr.bf16.mxu0 (!%p300_p2), %v1029_v1  ;;  %v991_v3 = vld [vmem:[%s1214_s3] sm:$0xff] (!%p300_p2)   ;;  %p341_p3 = scmp.lt.s32.totalorder (!%p300_p2), %s845_s17, 3  ;;  %v993_v4 = vld [vmem:[%s1214_s3 + $0x8] sm:$0xff] (!%p300_p2)   ;;  %vm392_vm1 = vcmask (!%p300_p2), 261120   ;;  %v995_v8 = vld [vmem:[%s1213_s2 + $0x18] sm:$0xff] (!%p300_p2)  }
   0x7   : > { %928 = vmatpush3.bf16.msra.mxu1 (!%p300_p2), %v989_v0  ;;  %923 = vmatprep.mubr.msk.bf16.mxu0 (!%p300_p2), %vm1030_vm0, %v1029_v1  ;;  %v997_v6 = vld [vmem:[%s1216_s5] sm:$0xff] (!%p300_p2)   ;;  %v998_v9 = vld [vmem:[%s1216_s5 + $0x8] sm:$0xff] (!%p300_p2)   ;;  %vm466_vm2 = vcmask (!%p300_p2), 523264   ;;  %v999_v11 = vld [vmem:[%s1216_s5 + $0x10] sm:$0xff] (!%p300_p2)  }
   0x8   : > { %929 = vmatprep.subr.bf16.mxu1 (!%p300_p2), %v1029_v1  ;;  %935 = vmatprep.mubr.msk.bf16.mxu1 (!%p300_p2), %vm1030_vm0, %v1029_v1  ;;  %v1000_v12 = vld [vmem:[%s1216_s5 + $0x18] sm:$0xff] (!%p300_p2)   ;;  %v1001_v13 = vld [vmem:[%s1216_s5 + $0x20] sm:$0xff] (!%p300_p2)   ;;  %v1002_v14 = vld [vmem:[%s1216_s5 + $0x28] sm:$0xff] (!%p300_p2)  }
   0x9   : > { %920 = vmatpush3.bf16.msra.mxu0 (!%p300_p2), %v991_v3  ;;  %v1003_v15 = vld [vmem:[%s1216_s5 + $0x30] sm:$0xff] (!%p300_p2)   ;;  %v1004_v16 = vld [vmem:[%s1216_s5 + $0x38] sm:$0xff] (!%p300_p2)   ;;  %v1005_v17 = vld [vmem:[%s1218_s7] sm:$0xff] (!%p300_p2)  }
   0xa   : > { %921 = vmatprep.subr.bf16.mxu0 (!%p300_p2), %v1029_v1  ;;  %v1006_v18 = vld [vmem:[%s1218_s7 + $0x8] sm:$0xff] (!%p300_p2)   ;;  %v1007_v19 = vld [vmem:[%s1218_s7 + $0x10] sm:$0xff] (!%p300_p2)   ;;  %v1008_v20 = vld [vmem:[%s1218_s7 + $0x18] sm:$0xff] (!%p300_p2)  }
   0xb   : > { %930 = vmatpush3.bf16.msra.mxu1 (!%p300_p2), %v990_v2  ;;  %v1009_v21 = vld [vmem:[%s1218_s7 + $0x20] sm:$0xff] (!%p300_p2)   ;;  %v1010_v22 = vld [vmem:[%s1218_s7 + $0x28] sm:$0xff] (!%p300_p2)   ;;  %v1011_v39 = vld [vmem:[%s1218_s7 + $0x30] sm:$0xff] (!%p300_p2)  }
   0xc   : > { %931 = vmatprep.subr.bf16.mxu1 (!%p300_p2), %v1029_v1  ;;  %v861_v28 = vld [vmem:[%s1215_s4] ss:$0 sm:$0xff] (!%p300_p2)  ;;  %v1012_v40 = vld [vmem:[%s1218_s7 + $0x38] sm:$0xff] (!%p300_p2)  }
   0xd   : > { %s1222_s17 = smov (!%p341_p3, %s845_s17), 3  ;;  %922 = vmatpush3.bf16.msra.mxu0 %v993_v4  ;;  %v862_v41 = vld [vmem:[%s1217_s6] ss:$0 sm:$0xff] }
   0xe   : > { %s1113_s22 = sshll.u32 %s1222_s17, 2  ;;  %939 = vmatprep.subr.bf16.mxu0 %v1029_v1  ;;  %v871_v51 = vld [vmem:[%s1219_s8] ss:$0 sm:$0xff] }
   0xf   : > { %s350_s25 = scalar_lea.vmem %s1212_s1, %s1113_s22  ;;  %s344_s10 = scalar_lea.vmem %s1211_s0, %s1113_s22  ;;  %932 = vmatpush3.bf16.msra.mxu1 %v992_v5 }
  0x10   : > { %v994_v7 = vld [vmem:[%s350_s25] sm:$0xff]   ;;  %933 = vmatprep.subr.bf16.mxu1 %v1029_v1  ;;  %s356_s13 = scalar_lea.vmem %s1220_s9, %s1113_s22 }
  0x11   : > { %924 = vmatmul.mubr.msk.bf16.vlgmr.msra.gmra.mrb[0].mxu0 %vm392_vm1, %v994_v7  ;;  %v996_v10 = vld [vmem:[%s344_s10] sm:$0xff]  }
  0x12   : > { %940 = vmatpush3.bf16.msra.mxu0 %v997_v6  ;;  %955 = vmatprep.mubr.msk.bf16.mxu0 %vm1030_vm0, %v1029_v1 }
  0x13   : > { %941 = vmatprep.subr.bf16.mxu0 %v1029_v1  ;;  %934 = vmatpush3.bf16.msra.mxu1 %v995_v8 }
  0x14   : > { %959 = vmatprep.subr.bf16.mxu1 %v1029_v1 }
  0x16   : > { %942 = vmatpush3.bf16.msra.mxu0 %v998_v9  ;;  %936 = vmatmul.mubr.msk.bf16.vlgmr.msra.gmra.mrb[0].mxu1 %vm466_vm2, %v996_v10 }
  0x17   : > { %943 = vmatprep.subr.bf16.mxu0 %v1029_v1  ;;  %975 = vmatprep.mubr.msk.bf16.mxu1 %vm1030_vm0, %v1029_v1 }
  0x18   : > { %960 = vmatpush3.bf16.msra.mxu1 %v1005_v17 }
  0x19   : > { %961 = vmatprep.subr.bf16.mxu1 %v1029_v1 }
  0x1a   : > { %944 = vmatpush3.bf16.msra.mxu0 %v999_v11 }
  0x1b   : > { %945 = vmatprep.subr.bf16.mxu0 %v1029_v1 }
  0x1c   : > { %962 = vmatpush3.bf16.msra.mxu1 %v1006_v18 }
  0x1d   : > { %963 = vmatprep.subr.bf16.mxu1 %v1029_v1 }
  0x1e   : > { %946 = vmatpush3.bf16.msra.mxu0 %v1000_v12 }
  0x1f   : > { %947 = vmatprep.subr.bf16.mxu0 %v1029_v1 }
  0x20   : > { %964 = vmatpush3.bf16.msra.mxu1 %v1007_v19 }
  0x21   : > { %965 = vmatprep.subr.bf16.mxu1 %v1029_v1 }
  0x22   : > { %948 = vmatpush3.bf16.msra.mxu0 %v1001_v13 }
  0x23   : > { %949 = vmatprep.subr.bf16.mxu0 %v1029_v1 }
  0x24   : > { %966 = vmatpush3.bf16.msra.mxu1 %v1008_v20 }
  0x25   : > { %967 = vmatprep.subr.bf16.mxu1 %v1029_v1 }
  0x26   : > { %950 = vmatpush3.bf16.msra.mxu0 %v1002_v14 }
  0x27   : > { %951 = vmatprep.subr.bf16.mxu0 %v1029_v1 }
  0x28   : > { %968 = vmatpush3.bf16.msra.mxu1 %v1009_v21 }
  0x29   : > { %969 = vmatprep.subr.bf16.mxu1 %v1029_v1 }
  0x2a   : > { %952 = vmatpush3.bf16.msra.mxu0 %v1003_v15 }
  0x2b   : > { %953 = vmatprep.subr.bf16.mxu0 %v1029_v1 }
  0x2c   : > { %970 = vmatpush3.bf16.msra.mxu1 %v1010_v22 }
  0x2d   : > { %971 = vmatprep.subr.bf16.mxu1 %v1029_v1 }
  0x2e   : > { %954 = vmatpush3.bf16.msra.mxu0 %v1004_v16 }
  0x30   : > { %972 = vmatpush3.bf16.msra.mxu1 %v1011_v39 }
  0x31   : > { %973 = vmatprep.subr.bf16.mxu1 %v1029_v1 }
  0x34   : > { %974 = vmatpush3.bf16.msra.mxu1 %v1012_v40 }
  0xe4   : > { %v430_v23 = vpop.f32.mrb[0].mxu0 }
  0xe5   : > { %v925_v24 = vpop.f32.mrb[1].mxu0 }
  0xe6   : > { %v433_v25 = vpop.f32.mrb[2].mxu0 }
  0xe7   : > { %v926_v26 = vpop.f32.mrb[3].mxu0 }
  0xe9   : > { %v504_v27 = vpop.f32.mrb[0].mxu1 }
  0xea   : > { %v505_v29 = vadd.f32 %v504_v27, %v430_v23  ;;  %v937_v30 = vpop.f32.mrb[1].mxu1 }
  0xeb   : > { %v507_v31 = vpop.f32.mrb[2].mxu1 }
  0xec   : > { %v518_v32 = vadd.f32 %v861_v28, %v505_v29  ;;  %v508_v33 = vadd.f32 %v507_v31, %v433_v25  ;;  %v938_v34 = vpop.f32.mrb[3].mxu1 }
  0xee   : > { %v519_v35 = vadd.f32 %v861_v28, %v508_v33  ;;  %v520_v36 = vmax.f32 %v518_v32, 0.0 }
  0xf0   : > { %v521_v37 = vmax.f32 %v519_v35, 0.0 }
  0xf2   : > { %v522_v38 = vpack.c.bf16 %v521_v37, %v520_v36 }
  0xf4   : > { %956 = vmatmul.mubr.bf16.vlgmr.msra.gmra.mrb[4].mxu0 %v522_v38 }
 0x1c7   : > { %v628_v42 = vpop.f32.mrb[4].mxu0 }
 0x1c8   : > { %v629_v43 = vadd.f32 %v862_v41, %v628_v42  ;;  %v957_v44 = vpop.f32.mrb[5].mxu0 }
 0x1c9   : > { %v631_v45 = vpop.f32.mrb[6].mxu0 }
 0x1ca   : > { %v632_v46 = vadd.f32 %v862_v41, %v631_v45  ;;  %v958_v47 = vpop.f32.mrb[7].mxu0  ;;  %v635_v48 = vmax.f32 %v629_v43, 0.0 }
 0x1cc   : > { %v636_v49 = vmax.f32 %v632_v46, 0.0 }
 0x1ce   : > { %v637_v50 = vpack.c.bf16 %v636_v49, %v635_v48 }
 0x1d0   : > { %976 = vmatmul.mubr.bf16.vlgmr.msra.gmra.mrb[4].mxu1 %v637_v50 }
 0x2a3   : > { %v743_v52 = vpop.f32.mrb[4].mxu1 }
 0x2a4   : > { %v744_v53 = vadd.f32 %v871_v51, %v743_v52  ;;  %v977_v54 = vpop.f32.mrb[5].mxu1 }
 0x2a5   : > { %v746_v55 = vpop.f32.mrb[6].mxu1 }
 0x2a6   : > { %v880_v56 = vmul.f32 -1.442695, %v744_v53  ;;  %v747_v57 = vadd.f32 %v871_v51, %v746_v55  ;;  %v978_v58 = vpop.f32.mrb[7].mxu1 }
 0x2a8   : > { %1013 = vpow2.f32 %v880_v56  ;;  %v881_v59 = vmul.f32 -1.442695, %v747_v57 }
 0x2aa   : > { %1015 = vpow2.f32 %v881_v59 }
 0x2b2   : > { %v1014_v60 = vpop.eup %1013 }
 0x2b3   : > { %v756_v61 = vadd.f32 1.0, %v1014_v60 }
 0x2b4   : > { %v1016_v62 = vpop.eup %1015 }
 0x2b5   : > { %v757_v63 = vadd.f32 1.0, %v1016_v62  ;;  %1017 = vrcp.f32 %v756_v61 }
 0x2b7   : > { %1019 = vrcp.f32 %v757_v63 }
 0x2bf   : > { %v1018_v0 = vpop.eup %1017 }
 0x2c1   : > { %v1020_v1 = vpop.eup %1019 }
 0x2c2   : > { %v891_v2 = vpack.c.bf16 %v1020_v1, %v1018_v0 }
 0x2c4   : > { %892 = vst [vmem:[%s356_s13] sm:$0xff] %v891_v2  }
 0x2c5 PF: > { %s19_s30 = sadd.s32 1, %s1027_s30  }
 0x2c6   : > { %p16_p4 = scmp.ge.s32.totalorder %s19_s30, 4  }
 0x2c8   :  { %18 = sbr.rel (!%p16_p4) target bundleno = 1 (0x1), region = 89 }

</bundles_post_ra>
